<compile_context>
chip_gen: v6e
topology: v6e:2x2x1
jax: 0.10.0
libtpu: 0.0.40
codegen_flags: <defaults>
</compile_context>

<pallas_src>
import math

import jax
import jax.numpy as jnp
from jax.experimental import pallas as pl
from jax.experimental.pallas import tpu as pltpu

_LANE = 128      # vreg lane width  (last-dim layout unit)
_SUBLANE = 8     # vreg sublane width (second-to-last-dim layout unit)


def sinusoidal_pe(max_len: int, d_model: int, dtype=jnp.float32):
    """Builds the same `pe` buffer as Position.__init__ (shape (max_len, d_model))."""
    position = jnp.arange(max_len, dtype=jnp.float32)[:, None]          # (L, 1)
    div_term = jnp.exp(
        jnp.arange(0, d_model, 2, dtype=jnp.float32) * (-math.log(10000.0) / d_model)
    )                                                                    # (D/2,)
    ang = position * div_term                                            # (L, D/2)
    pe = jnp.zeros((max_len, d_model), dtype=jnp.float32)
    pe = pe.at[:, 0::2].set(jnp.sin(ang))
    pe = pe.at[:, 1::2].set(jnp.cos(ang))
    return pe.astype(dtype)


def _pos_add_kernel(x_ref, pe_ref, o_ref):
    # x_ref: (TB, TC), pe_ref: (1, TC) -> broadcast add over the batch rows.
    o_ref[...] = x_ref[...] + pe_ref[...]


def _pick_tiles(B: int, N: int, itemsize: int, tile_bytes: int):
    """Choose (TB, TC) for the (B, N) flattened view.

    Invariants:
      * TC is a multiple of 128 or equal to N; TB is a multiple of 8 or equal
        to B (the TPU (8, 128) block-layout rule).  Tiles need NOT divide the
        array dims -- ragged tails are masked by Pallas.
      * TB * TC * itemsize <= tile_bytes (no silent VMEM blowups).
      * For inputs > 4 MiB the grid has at least 2 blocks, so v7x's two
        TensorCores both get work.
    """
    tile_elems = max(_LANE * _SUBLANE, tile_bytes // itemsize)

    # Lane (column) tile first: as wide as possible given the minimum row
    # count we will use, to keep stores full-width and DMAs contiguous.
    min_rows = B if B < _SUBLANE else _SUBLANE
    cols_budget = max(_LANE, tile_elems // min_rows)
    if N <= cols_budget:
        TC = N                                                # full dim: layout-legal
    else:
        TC = max(_LANE, (cols_budget // _LANE) * _LANE)       # mult of 128; tail masked

    # Sublane (batch) tile: fill the remaining per-tile budget.
    rows_budget = max(min_rows, tile_elems // max(TC, 1))
    if B <= rows_budget:
        TB = B                                                # full dim: layout-legal
    else:
        TB = max(_SUBLANE, (rows_budget // _SUBLANE) * _SUBLANE)  # mult of 8; tail masked

    # Never collapse to a (1, 1) grid for non-trivial inputs: v7x megacore
    # shards "parallel" grid axes across its 2 TensorCores (~2x for mem-bound).
    if B * N * itemsize > (4 << 20) and pl.cdiv(N, TC) * pl.cdiv(B, TB) < 2:
        if N > _LANE:
            TC = max(_LANE, ((N // 2) // _LANE) * _LANE)
        elif B > _SUBLANE:
            TB = max(_SUBLANE, ((B // 2) // _SUBLANE) * _SUBLANE)

    return TB, TC


def position_forward(x, pe, *, tile_bytes=4 * 1024 * 1024, donate_x=False):
    """Equivalent of Position.forward(x, pos_list=None) in eval mode."""
    B, S, D = x.shape
    max_len = pe.shape[0]
    if S > max_len:
        raise ValueError(f"sequence length {S} exceeds max_len {max_len}")

    dtype = x.dtype
    itemsize = jnp.dtype(dtype).itemsize
    N = S * D

    # Lane-dense views: elementwise add is layout-agnostic, so flatten (S, D).
    pe_flat = pe[:S].astype(dtype).reshape(1, N)    # cast once, outside kernel
    x2 = x.reshape(B, N)

    TB, TC = _pick_tiles(B, N, itemsize, tile_bytes)

    # Batch innermost => pe block index constant across consecutive steps,
    # so Pallas skips re-fetching the pe tile for every batch block.
    grid = (pl.cdiv(N, TC), pl.cdiv(B, TB))

    # Explicit VMEM budget: double-buffered x + out tiles + double-buffered pe
    # tile.  Only override the scoped-VMEM default when we actually need more
    # than the smallest default (16 MiB on v5e); cap well under v7x's 64 MiB.
    x_tile_bytes = TB * TC * itemsize
    pe_tile_bytes = TC * itemsize
    vmem_need = 2 * (2 * x_tile_bytes) + 2 * pe_tile_bytes
    compiler_kwargs = dict(dimension_semantics=("parallel", "parallel"))
    if vmem_need + (2 << 20) > (16 << 20):
        compiler_kwargs["vmem_limit_bytes"] = int(min(vmem_need + (4 << 20), 48 << 20))

    call_kwargs = {}
    if donate_x:
        # Reuse x's HBM buffer for the output (caller must not reuse x).
        call_kwargs["input_output_aliases"] = {0: 0}

    out2 = pl.pallas_call(
        _pos_add_kernel,
        out_shape=jax.ShapeDtypeStruct((B, N), dtype),
        grid=grid,
        in_specs=[
            pl.BlockSpec((TB, TC), lambda c, b: (b, c)),   # x tile
            pl.BlockSpec((1, TC), lambda c, b: (0, c)),    # pe tile (shared over batch)
        ],
        out_specs=pl.BlockSpec((TB, TC), lambda c, b: (b, c)),
        compiler_params=pltpu.CompilerParams(**compiler_kwargs),
        **call_kwargs,
    )(x2, pe_flat)

    return out2.reshape(B, S, D)


if __name__ == "__main__":
    d_model = 32
    max_len = 5000
    batch, seq = 2, 8

    key = jax.random.PRNGKey(0)
    x = jax.random.normal(key, (batch, seq, d_model), dtype=jnp.float32)

    pe = sinusoidal_pe(max_len, d_model)       # deterministic "buffer" init

    out = position_forward(x, pe)
    out = jax.block_until_ready(out)

    # Pure-JAX reference (Position.forward in eval mode, pos_list=None).
    ref = x + pe[None, :seq, :]
    assert out.shape == x.shape and out.dtype == x.dtype
    assert jnp.allclose(out, ref, atol=1e-6, rtol=1e-6), "mismatch vs reference"

    print("KERNEL_OK")
</pallas_src>

<mosaic_0001>
module attributes {stable_mosaic.version = 11 : i64} {
  func.func @_pos_add_kernel(%arg0: i32, %arg1: i32, %arg2: memref<2x256xf32, #tpu.memory_space<vmem>>, %arg3: memref<1x256xf32, #tpu.memory_space<vmem>>, %arg4: memref<2x256xf32, #tpu.memory_space<vmem>>) attributes {dimension_semantics = [#tpu.dimension_semantics<parallel>, #tpu.dimension_semantics<parallel>], iteration_bounds = array<i64: 1, 1>, scalar_prefetch = 0 : i64, scratch_operands = 0 : i64, tpu.core_type = #tpu.core_type<tc>, window_params = [{transform_indices = @transform_0, window_bounds = array<i64: 2, 256>}, {transform_indices = @transform_1, window_bounds = array<i64: 1, 256>}, {transform_indices = @transform_2, window_bounds = array<i64: 2, 256>}]} {
    %c0 = arith.constant 0 : index
    %c0_0 = arith.constant 0 : index
    %0 = vector.load %arg2[%c0, %c0_0] : memref<2x256xf32, #tpu.memory_space<vmem>>, vector<2x256xf32>
    %c0_1 = arith.constant 0 : index
    %c0_2 = arith.constant 0 : index
    %1 = vector.load %arg3[%c0_1, %c0_2] : memref<1x256xf32, #tpu.memory_space<vmem>>, vector<1x256xf32>
    %2 = vector.broadcast %1 : vector<1x256xf32> to vector<2x256xf32>
    %3 = arith.addf %0, %2 : vector<2x256xf32>
    %c0_3 = arith.constant 0 : index
    %c0_4 = arith.constant 0 : index
    %4 = vector.load %arg4[%c0_3, %c0_4] : memref<2x256xf32, #tpu.memory_space<vmem>>, vector<2x256xf32>
    tpu.vector_store %arg4[%c0_3, %c0_4], %3 {strides = array<i32>} : memref<2x256xf32, #tpu.memory_space<vmem>>, vector<2x256xf32>,
    return
  }
  func.func @transform_0(%arg0: i32, %arg1: i32) -> (i32, i32) {
    %c0_i32 = arith.constant 0 : i32
    return %arg1, %arg0 : i32, i32
  }
  func.func @transform_1(%arg0: i32, %arg1: i32) -> (i32, i32) {
    %c0_i32 = arith.constant 0 : i32
    %c0_i32_0 = arith.constant 0 : i32
    return %c0_i32, %arg0 : i32, i32
  }
  func.func @transform_2(%arg0: i32, %arg1: i32) -> (i32, i32) {
    %c0_i32 = arith.constant 0 : i32
    return %arg1, %arg0 : i32, i32
  }
}

</mosaic_0001>

<bundles_post_ra>
// kernel: tpu_custom_call.1
= control target key start
LH: loop header
LB: loop body
LE: loop exit
PB: predicated region body
PF: predicated region fallthrough
CT: control target
= control target key end

     0   :  { %7 = vsyncpa [#allocation3], 0  ;;  %s172_s0 = inlined_call_operand.hbm [shape: f32[2,256], index: 0, kind: input, shape index: {}]   ;;  %s173_s1 = inlined_call_operand.hbm [shape: f32[1,256], index: 1, kind: input, shape index: {}]   ;;  %s174_s2 = inlined_call_operand.hbm [shape: f32[2,256], index: 2, kind: output, shape index: {}]  }
   0x1   :  { %8 = vsyncpa [#allocation6], 0 }
   0x2   :  { %9 = vsyncpa [#allocation4], 0  ;;  %s144_s9 = smov [#allocation2]   ;;  %s145_s11 = smov [#allocation5]  }
   0x3   :  { %s16_s10 = sshll.u32 %s144_s9, 4  ;;  %s26_s12 = sshll.u32 %s145_s11, 4  ;;  %s17_s10 = int_to_ptr.vmem [resolvable:$true] %s16_s10  ;;  %s27_s12 = int_to_ptr.vmem [resolvable:$true] %s26_s12 }
   0x4   :  { %s86_s13 = scalar_lea.vmem %s17_s10, 64  ;;  %p91_p1 = scmp.lt.s32.totalorder %s17_s10, %s17_s10 }
   0x5   :  { %p87_p0 = scmp.ne.s32.totalorder %s17_s10, %s86_s13  ;;  %p92_p2 = scmp.lt.s32.totalorder %s86_s13, %s86_s13 }
   0x7   :  { %p93_p3 = por %p92_p2, %p91_p1 }
   0x9   :  { %p94_p4 = pnand %p93_p3, %p87_p0 }
   0xb   :  { %97 = shalt.err (!%p94_p4)
}
   0xc   :  { %19 = dma.hbm_to_vmem [thread:$0]  %s172_s0, 64, %s17_s10, [#allocation3]  }
   0xd   :  { %s106_s16 = scalar_lea.vmem %s27_s12, 32  ;;  %p111_p6 = scmp.lt.s32.totalorder %s27_s12, %s27_s12 }
   0xe   :  { %p107_p5 = scmp.ne.s32.totalorder %s27_s12, %s106_s16  ;;  %p112_p7 = scmp.lt.s32.totalorder %s106_s16, %s106_s16 }
  0x10   :  { %p113_p8 = por %p112_p7, %p111_p6 }
  0x12   :  { %p114_p9 = pnand %p113_p8, %p107_p5 }
  0x14   :  { %117 = shalt.err (!%p114_p9)
}
  0x15   :  { %29 = dma.hbm_to_vmem [thread:$0]  %s173_s1, 32, %s27_s12, [#allocation6]  }
  0x16   :  { %138 = dma.done.wait [#allocation3], 64  }
  0x17   :  { %139 = vsyncadd [#allocation3], 4294967232 }
  0x18   :  { %140 = dma.done.wait [#allocation6], 32  }
  0x19   :  { %141 = vsyncadd [#allocation6], 4294967264  ;;  %v39_v0 = vlaneseq  ;;  %v146_v1 = vmov 1983009808   ;;  %v37_v7 = vld [vmem:[#allocation5] sm:$0x3] }
  0x1a   :  { %v49_v2 = vunpack.c.l.s4 %v146_v1  ;;  %v36_v12 = vld [vmem:[#allocation2] sm:$0xf]  ;;  %s147_s0 = smov [#allocation7]  }
  0x1b   :  { %v40_v3 = vshrl.u32 %v39_v0, 7  ;;  %s64_s19 = sshll.u32 %s147_s0, 4  ;;  %s65_s19 = int_to_ptr.vmem [resolvable:$true] %s64_s19 }
  0x1c   :  { %v50_v6 = vunpack.c.0.s8 %v49_v2  ;;  %s118_s1 = scalar_lea.vmem %s65_s19, 64  ;;  %p123_p11 = scmp.lt.s32.totalorder %s65_s19, %s65_s19 }
  0x1d   :  { %v41_v4 = vsub.s32 0, %v40_v3  ;;  %v45_v5 = vsub.s32 1, %v40_v3  ;;  %p119_p10 = scmp.ne.s32.totalorder %s65_s19, %s118_s1  ;;  %p124_p12 = scmp.lt.s32.totalorder %s118_s1, %s118_s1 }
  0x1e   :  { %v53_v10 = vsub.s32 %v50_v6, %v40_v3 }
  0x1f   :  { %v42_v8 = vrot.slane %v37_v7, %v41_v4  ;;  %v46_v9 = vrot.slane %v37_v7, %v45_v5  ;;  %p125_p13 = por %p124_p12, %p123_p11 }
  0x21   :  { %v47_v11 = vcombine.low %v42_v8, %v46_v9  ;;  %p126_p0 = pnand %p125_p13, %p119_p10 }
  0x23   :  { %v54_v13 = vrot.slane %v47_v11, %v53_v10 }
  0x25   :  { %v56_v14 = vadd.f32 %v54_v13, %v36_v12 }
  0x27   :  { %57 = vst [vmem:[#allocation7] sm:$0xf] %v56_v14 }
  0x28   :  { %129 = shalt.err (!%p126_p0)
}
  0x29   :  { %67 = dma.vmem_to_hbm [thread:$0]  %s65_s19, 64, %s174_s2, [#allocation4]  }
  0x2a   :  { %142 = dma.done.wait [#allocation4], 64  }
  0x2b   :  { %143 = vsyncadd [#allocation4], 4294967232 }
  0x2c   :  { %71 = vsyncpa [#allocation3], 1 }
  0x2d   :  { %72 = vsyncpa [#allocation6], 1 }
  0x2e   :  { %73 = vsyncpa [#allocation4], 1 }

</bundles_post_ra>
